<compile_context>
chip_gen: v7x
topology: tpu7x:2x2x1
jax: 0.10.0
libtpu: 0.0.40
codegen_flags: <defaults>
</compile_context>

<pallas_src>
import functools

import jax
import jax.numpy as jnp
from jax.experimental import pallas as pl
from jax.experimental.pallas import tpu as pltpu

_MIB = 1024 * 1024


def _round_up(x, m):
    return ((x + m - 1) // m) * m


def _cdiv(a, b):
    return (a + b - 1) // b


def _tpu_vmem_capacity_bytes():
    """Physical VMEM capacity of the attached TPU; conservative fallback."""
    try:
        return int(pltpu.get_tpu_info().vmem_capacity_bytes)
    except Exception:
        return 64 * _MIB  # v7x per-TC VMEM — safe lower bound for any chip


def _pick_ti(intermediate_size, hidden_size, vmem_budget_bytes):
    """Largest lane-aligned intermediate tile whose double-buffered weight
    tiles (wgu (H,2ti) + wd (ti,H), bf16) take at most ~half the VMEM budget."""
    for cand in (1024, 512, 256, 128):
        if intermediate_size % cand == 0 and 12 * hidden_size * cand <= vmem_budget_bytes // 2:
            return cand
    for cand in (1024, 512, 256, 128):  # tiny test shapes / tiny budgets
        if intermediate_size % cand == 0:
            return cand
    raise ValueError(f"intermediate_size={intermediate_size} has no 128-multiple tile")


def _pick_tm(num_tokens, hidden_size, ti, vmem_budget_bytes, pad_unit, tm_max):
    """Token tile: as large as the VMEM budget allows (up to tm_max), rounded
    to the packing unit, and balanced across tiles to avoid padding waste."""
    fixed = 12 * hidden_size * ti          # double-buffered bf16 weight tiles
    per_row = 12 * hidden_size             # 2x bf16 x + 2x bf16 out + f32 acc, per token row
    avail = max(vmem_budget_bytes - fixed, per_row * pad_unit)
    tm_cap = max((avail // per_row) // pad_unit * pad_unit, pad_unit)
    tm_target = max(min(tm_max, tm_cap) // pad_unit * pad_unit, pad_unit)

    t_padded = _round_up(num_tokens, pad_unit)
    if t_padded <= tm_target:
        return t_padded                    # decode / small batch: one token tile
    n_tiles = _cdiv(num_tokens, tm_target)
    return _round_up(_cdiv(num_tokens, n_tiles), pad_unit)


def _llama_mlp_kernel(x_ref, wgu_ref, wd_ref, o_ref, acc_ref, *, ti):
    # grid axis 0: token tiles (parallel); grid axis 1: intermediate tiles
    # (reduction of the down projection -> accumulator resident across it).
    @pl.when(pl.program_id(1) == 0)
    def _():
        acc_ref[...] = jnp.zeros_like(acc_ref)

    x = x_ref[...]                                                      # (tm, H)

    # Fused gate+up matmul: the packed weight block is [gate_tile | up_tile],
    # so one MXU matmul produces both halves; the split is lane-aligned.
    gu = jnp.dot(x, wgu_ref[...], preferred_element_type=jnp.float32)   # (tm, 2*ti)
    g = gu[:, :ti]
    u = gu[:, ti:]

    # SiLU(g) * u in f32.  exp and the approximate reciprocal both land on the
    # EUP slot; the exp argument is clamped so exp(-g) never becomes inf.
    e = jnp.exp(jnp.minimum(-g, 80.0))
    h = g * pl.reciprocal(1.0 + e, approx=True) * u                     # (tm, ti) f32

    # Partial down projection for this intermediate tile (wd_ref is W_down^T tile).
    acc_ref[...] += jnp.dot(h.astype(wd_ref.dtype), wd_ref[...],
                            preferred_element_type=jnp.float32)         # (tm, H)

    @pl.when(pl.program_id(1) == pl.num_programs(1) - 1)
    def _():
        o_ref[...] = acc_ref[...].astype(o_ref.dtype)


def prepack_llama_mlp_weights(w_gate_up, w_down, *, ti=None, dtype=jnp.bfloat16):
    """One-time weight re-layout.  Call OUTSIDE the per-step hot path.

    w_gate_up : [2I, H]  PyTorch [out, in] layout, gate rows then up rows.
    w_down    : [H,  I]  PyTorch [out, in] layout.

    Returns (wgu_packed [H, 2I], wd_t [I, H], ti).  `ti` (chosen chip-aware if
    None) must be passed unchanged to llama_mlp().
    """
    two_I, H = w_gate_up.shape
    I = two_I // 2
    assert w_down.shape == (H, I), (w_down.shape, (H, I))

    if ti is None:
        vmem_budget = int(_tpu_vmem_capacity_bytes() * 7 // 8) - 4 * _MIB
        ti = _pick_ti(I, H, vmem_budget)
    assert ti % 128 == 0, "ti must be a multiple of 128 (lane width)"
    assert I % ti == 0, f"intermediate size {I} must be divisible by ti={ti}"

    wg_t = w_gate_up[:I].T.reshape(H, I // ti, ti)   # gate, [H, nI, ti]
    wu_t = w_gate_up[I:].T.reshape(H, I // ti, ti)   # up,   [H, nI, ti]
    wgu_packed = jnp.stack([wg_t, wu_t], axis=2).reshape(H, 2 * I).astype(dtype)
    wd_t = w_down.T.astype(dtype)                    # [I, H]
    return wgu_packed, wd_t, ti


def llama_mlp(hidden_states, wgu_packed, wd_t, *, ti, tm=None,
              vmem_limit_bytes=None, out_dtype=None):
    """hidden_states: [T, H]; prepacked weights (+ ti) from
    prepack_llama_mlp_weights.  Returns [T, H]."""
    T, H = hidden_states.shape
    H2, two_I = wgu_packed.shape
    assert H2 == H, (H2, H)
    I = two_I // 2
    assert wd_t.shape == (I, H), (wd_t.shape, (I, H))
    assert I % ti == 0 and ti % 128 == 0, "ti must match prepack_llama_mlp_weights"

    out_dtype = out_dtype or hidden_states.dtype

    # Chip-aware VMEM budget (112 MiB limit on 128 MiB chips, 56 MiB on v7x).
    if vmem_limit_bytes is None:
        vmem_limit_bytes = int(_tpu_vmem_capacity_bytes() * 7 // 8)
    vmem_budget = vmem_limit_bytes - 4 * _MIB   # headroom for compiler scratch

    # bf16 activations pack 16 rows per sublane group; pad the token axis to
    # that unit so decode-sized tiles hit the native (16, 128) layout.
    pad_unit = 16 if jnp.dtype(hidden_states.dtype).itemsize <= 2 else 8
    tm_max = tm if tm is not None else 1024
    tm_eff = _pick_tm(T, H, ti, vmem_budget, pad_unit, tm_max)

    T_pad = _round_up(T, tm_eff)
    x = hidden_states
    if T_pad != T:
        x = jnp.pad(x, ((0, T_pad - T), (0, 0)))   # padded rows -> zeros, sliced off

    grid = (T_pad // tm_eff, I // ti)
    kernel = functools.partial(_llama_mlp_kernel, ti=ti)

    # TODO(synk): when VMEM is very tight, x/out could use pipeline_mode=
    #             pl.Buffered(1) (they only change on the outer axis) to free
    #             ~2*tm*H*2 bytes; not needed with the budget-fit tiles above.
    out = pl.pallas_call(
        kernel,
        out_shape=jax.ShapeDtypeStruct((T_pad, H), out_dtype),
        grid_spec=pltpu.PrefetchScalarGridSpec(
            num_scalar_prefetch=0,
            grid=grid,
            in_specs=[
                pl.BlockSpec((tm_eff, H), lambda i, k: (i, 0)),   # activation tile
                pl.BlockSpec((H, 2 * ti), lambda i, k: (0, k)),   # packed [gate|up] tile
                pl.BlockSpec((ti, H), lambda i, k: (k, 0)),       # down^T tile
            ],
            out_specs=pl.BlockSpec((tm_eff, H), lambda i, k: (i, 0)),
            scratch_shapes=[pltpu.VMEM((tm_eff, H), jnp.float32)],
        ),
        compiler_params=pltpu.CompilerParams(
            dimension_semantics=("parallel", "arbitrary"),
            vmem_limit_bytes=vmem_limit_bytes),
    )(x, wgu_packed, wd_t)

    return out[:T] if T_pad != T else out


def llama_mlp_reference(x, w_gate_up, w_down):
    I = w_gate_up.shape[0] // 2
    gate_up = x @ w_gate_up.T                       # [T, 2I]
    gate, up = gate_up[:, :I], gate_up[:, I:]       # == view(-1, 2, I)[:, 0]/[:, 1]
    return (gate * jax.nn.sigmoid(gate) * up) @ w_down.T


if __name__ == "__main__":
    # Small, module-consistent shapes.  T=40 with tm=16 gives 3 token tiles
    # (ragged edge + "parallel" axis exercised); ti=128 gives 4 reduction steps
    # (accumulator init/accumulate/finalize exercised).
    T, H, I = 40, 256, 512
    tm, ti = 16, 128

    key = jax.random.PRNGKey(0)
    k_x, k_gu, k_d = jax.random.split(key, 3)

    x = jax.random.normal(k_x, (T, H), dtype=jnp.float32).astype(jnp.bfloat16)
    w_gate_up = (0.02 * jax.random.normal(k_gu, (2 * I, H), dtype=jnp.float32)
                 ).astype(jnp.bfloat16)
    w_down = (0.02 * jax.random.normal(k_d, (H, I), dtype=jnp.float32)
              ).astype(jnp.bfloat16)

    # One-time prepack (corresponds to weight loading in the PyTorch module).
    wgu_packed, wd_t, ti = prepack_llama_mlp_weights(w_gate_up, w_down, ti=ti)

    out = llama_mlp(x, wgu_packed, wd_t, ti=ti, tm=tm)
    out = jax.block_until_ready(out)

    ref = llama_mlp_reference(x.astype(jnp.float32),
                              w_gate_up.astype(jnp.float32),
                              w_down.astype(jnp.float32))

    assert out.shape == (T, H), out.shape
    assert jnp.allclose(out.astype(jnp.float32), ref, atol=5e-3, rtol=5e-2), \
        "mismatch vs reference"

    print("KERNEL_OK")
</pallas_src>

<mosaic_0001>
module attributes {stable_mosaic.version = 11 : i64} {
  func.func @_llama_mlp_kernel(%arg0: i32, %arg1: i32, %arg2: memref<16x256xbf16, #tpu.memory_space<vmem>>, %arg3: memref<256x256xbf16, #tpu.memory_space<vmem>>, %arg4: memref<128x256xbf16, #tpu.memory_space<vmem>>, %arg5: memref<16x256xbf16, #tpu.memory_space<vmem>>, %arg6: memref<16x256xf32, #tpu.memory_space<vmem>>) attributes {dimension_semantics = [#tpu.dimension_semantics<parallel>, #tpu.dimension_semantics<arbitrary>], iteration_bounds = array<i64: 3, 4>, scalar_prefetch = 0 : i64, scratch_operands = 1 : i64, tpu.core_type = #tpu.core_type<tc>, window_params = [{transform_indices = @transform_0, window_bounds = array<i64: 16, 256>}, {transform_indices = @transform_1, window_bounds = array<i64: 256, 256>}, {transform_indices = @transform_2, window_bounds = array<i64: 128, 256>}, {transform_indices = @transform_3, window_bounds = array<i64: 16, 256>}]} {
    %c0_i32 = arith.constant 0 : i32
    %0 = arith.cmpi eq, %arg1, %c0_i32 : i32
    %1 = arith.extui %0 : i1 to i32
    %c0_i32_0 = arith.constant 0 : i32
    %2 = arith.cmpi ne, %1, %c0_i32_0 : i32
    scf.if %2 {
      %cst_15 = arith.constant 0.000000e+00 : f32
      %27 = vector.broadcast %cst_15 : f32 to vector<16x256xf32>
      %c0_16 = arith.constant 0 : index
      %c0_17 = arith.constant 0 : index
      %28 = vector.load %arg6[%c0_16, %c0_17] : memref<16x256xf32, #tpu.memory_space<vmem>>, vector<16x256xf32>
      tpu.vector_store %arg6[%c0_16, %c0_17], %27 {strides = array<i32>} : memref<16x256xf32, #tpu.memory_space<vmem>>, vector<16x256xf32>,
    } else {
    }
    %c0 = arith.constant 0 : index
    %c0_1 = arith.constant 0 : index
    %3 = vector.load %arg2[%c0, %c0_1] : memref<16x256xbf16, #tpu.memory_space<vmem>>, vector<16x256xbf16>
    %c0_2 = arith.constant 0 : index
    %c0_3 = arith.constant 0 : index
    %4 = vector.load %arg3[%c0_2, %c0_3] : memref<256x256xbf16, #tpu.memory_space<vmem>>, vector<256x256xbf16>
    %cst = arith.constant dense<0.000000e+00> : vector<16x256xf32>
    %5 = tpu.matmul %3, %4, %cst {dimension_numbers = #tpu.dot_dimension_numbers<[1], [0], [0], [1], [0, 0, 1, 1], [], []>} : vector<16x256xbf16>, vector<256x256xbf16>, vector<16x256xf32> -> vector<16x256xf32>
    %6 = vector.extract_strided_slice %5 {offsets = [0, 0], sizes = [16, 128], strides = [1, 1]} : vector<16x256xf32> to vector<16x128xf32>
    %7 = vector.extract_strided_slice %5 {offsets = [0, 128], sizes = [16, 128], strides = [1, 1]} : vector<16x256xf32> to vector<16x128xf32>
    %cst_4 = arith.constant 0.000000e+00 : f32
    %8 = vector.broadcast %cst_4 : f32 to vector<16x128xf32>
    %9 = arith.subf %8, %6 : vector<16x128xf32>
    %cst_5 = arith.constant 8.000000e+01 : f32
    %10 = vector.broadcast %cst_5 : f32 to vector<16x128xf32>
    %11 = arith.minimumf %9, %10 : vector<16x128xf32>
    %12 = math.exp %11 : vector<16x128xf32>
    %cst_6 = arith.constant 1.000000e+00 : f32
    %13 = vector.broadcast %cst_6 : f32 to vector<16x128xf32>
    %14 = arith.addf %13, %12 : vector<16x128xf32>
    %15 = tpu.reciprocal %14 {approx = true} : vector<16x128xf32> -> vector<16x128xf32>
    %16 = arith.mulf %6, %15 : vector<16x128xf32>
    %17 = arith.mulf %16, %7 : vector<16x128xf32>
    %c0_7 = arith.constant 0 : index
    %c0_8 = arith.constant 0 : index
    %18 = vector.load %arg6[%c0_7, %c0_8] : memref<16x256xf32, #tpu.memory_space<vmem>>, vector<16x256xf32>
    %19 = arith.truncf %17 : vector<16x128xf32> to vector<16x128xbf16>
    %c0_9 = arith.constant 0 : index
    %c0_10 = arith.constant 0 : index
    %20 = vector.load %arg4[%c0_9, %c0_10] : memref<128x256xbf16, #tpu.memory_space<vmem>>, vector<128x256xbf16>
    %cst_11 = arith.constant dense<0.000000e+00> : vector<16x256xf32>
    %21 = tpu.matmul %19, %20, %cst_11 {dimension_numbers = #tpu.dot_dimension_numbers<[1], [0], [0], [1], [0, 0, 1, 1], [], []>} : vector<16x128xbf16>, vector<128x256xbf16>, vector<16x256xf32> -> vector<16x256xf32>
    %22 = arith.addf %18, %21 : vector<16x256xf32>
    %c0_12 = arith.constant 0 : index
    %c0_13 = arith.constant 0 : index
    %23 = vector.load %arg6[%c0_12, %c0_13] : memref<16x256xf32, #tpu.memory_space<vmem>>, vector<16x256xf32>
    tpu.vector_store %arg6[%c0_12, %c0_13], %22 {strides = array<i32>} : memref<16x256xf32, #tpu.memory_space<vmem>>, vector<16x256xf32>,
    %c3_i32 = arith.constant 3 : i32
    %24 = arith.cmpi eq, %arg1, %c3_i32 : i32
    %25 = arith.extui %24 : i1 to i32
    %c0_i32_14 = arith.constant 0 : i32
    %26 = arith.cmpi ne, %25, %c0_i32_14 : i32
    scf.if %26 {
      %c0_15 = arith.constant 0 : index
      %c0_16 = arith.constant 0 : index
      %27 = vector.load %arg6[%c0_15, %c0_16] : memref<16x256xf32, #tpu.memory_space<vmem>>, vector<16x256xf32>
      %28 = arith.truncf %27 : vector<16x256xf32> to vector<16x256xbf16>
      %c0_17 = arith.constant 0 : index
      %c0_18 = arith.constant 0 : index
      %29 = vector.load %arg5[%c0_17, %c0_18] : memref<16x256xbf16, #tpu.memory_space<vmem>>, vector<16x256xbf16>
      tpu.vector_store %arg5[%c0_17, %c0_18], %28 {strides = array<i32>} : memref<16x256xbf16, #tpu.memory_space<vmem>>, vector<16x256xbf16>,
    } else {
    }
    return
  }
  func.func @transform_0(%arg0: i32, %arg1: i32) -> (i32, i32) {
    %c0_i32 = arith.constant 0 : i32
    %c0_i32_0 = arith.constant 0 : i32
    return %arg0, %c0_i32 : i32, i32
  }
  func.func @transform_1(%arg0: i32, %arg1: i32) -> (i32, i32) {
    %c0_i32 = arith.constant 0 : i32
    %c0_i32_0 = arith.constant 0 : i32
    return %c0_i32, %arg1 : i32, i32
  }
  func.func @transform_2(%arg0: i32, %arg1: i32) -> (i32, i32) {
    %c0_i32 = arith.constant 0 : i32
    %c0_i32_0 = arith.constant 0 : i32
    return %arg1, %c0_i32 : i32, i32
  }
  func.func @transform_3(%arg0: i32, %arg1: i32) -> (i32, i32) {
    %c0_i32 = arith.constant 0 : i32
    %c0_i32_0 = arith.constant 0 : i32
    return %arg0, %c0_i32 : i32, i32
  }
}

</mosaic_0001>

<bundles_post_ra>
// kernel: tpu_custom_call.1
= control target key start
LH: loop header
LB: loop body
LE: loop exit
PB: predicated region body
PF: predicated region fallthrough
CT: control target
= control target key end

     0   :  { %s1836_s0 = inlined_call_operand.hbm [shape: bf16[48,256], index: 0, kind: input, shape index: {}]   ;;  %s1837_s1 = inlined_call_operand.hbm [shape: bf16[256,1024], index: 1, kind: input, shape index: {}]   ;;  %s1838_s2 = inlined_call_operand.hbm [shape: bf16[512,256], index: 2, kind: input, shape index: {}]   ;;  %s1839_s3 = inlined_call_operand.hbm [shape: bf16[48,256], index: 3, kind: output, shape index: {}]  }
   0x1   :  { %1856 = sst [smem:[#allocation19_spill]] %s1837_s1 }
   0x2   :  { %1857 = sst [smem:[#allocation20_spill]] %s1839_s3 }
   0x3   :  { %8 = vsyncpa [#allocation4], 0 }
   0x4   :  { %10 = vsyncpa [#allocation4 + $0x1], 0 }
   0x5   :  { %11 = vsyncpa [#allocation7], 0 }
   0x6   :  { %13 = vsyncpa [#allocation7 + $0x1], 0 }
   0x7   :  { %14 = vsyncpa [#allocation5], 0 }
   0x8   :  { %16 = vsyncpa [#allocation5 + $0x1], 0  ;;  %s1412_s12 = smov 0   ;;  %s1414_s13 = smov 0  }
   0x9   :  { %s1416_s14 = smov 0   ;;  %s1418_s15 = smov 0  }
   0xa   :  { %s1420_s16 = smov 0   ;;  %s1422_s17 = smov 0  }
   0xb   :  { %s1424_s18 = smov 0   ;;  %s1426_s19 = smov 0  }
   0xc   :  { %s1428_s20 = smov 0   ;;  %s1430_s21 = smov 0  }
   0xd   :  { %s1432_s22 = smov 0  }
   0xe LB: > { %1858 = sst [smem:[#allocation13_spill]] %s1359_s17  ;;  %s31_s23 = sadd.s32 1, %s1371_s20  ;;  %s1379_s22 = sphi %s1432_s22, %s22_s22   ;;  %s1375_s21 = sphi %s1430_s21, %s1895_s21   ;;  %s1371_s20 = sphi %s1428_s20, %s1902_s20   ;;  %s1367_s19 = sphi %s1426_s19, %s1893_s19   ;;  %s1363_s18 = sphi %s1424_s18, %s1901_s18   ;;  %s1359_s17 = sphi %s1422_s17, %s1892_s17   ;;  %s1355_s16 = sphi %s1420_s16, %s1900_s16   ;;  %s1351_s15 = sphi %s1418_s15, %s1899_s15   ;;  %s1347_s14 = sphi %s1416_s14, %s1898_s14   ;;  %s1343_s13 = sphi %s1414_s13, %s1897_s13   ;;  %s1339_s12 = sphi %s1412_s12, %s1896_s12  }
   0xf   : > { %1859 = sst [smem:[#allocation14_spill]] %s1375_s21  ;;  %p1841_p0 = scmp.eq.s32.totalorder %s1379_s22, 0 }
  0x10   : > { %p1469_p1 = scmp.ge.s32.totalorder %s31_s23, 4  ;;  %s67_s25 = sadd.s32 1, %s1347_s14 }
  0x11   : > { %p74_p2 = scmp.ne.s32.totalorder %s1347_s14, %s1343_s13  ;;  %p1840_p5 = scmp.lt.s32.totalorder %s1379_s22, 12 }
  0x12   : > { %s1904_s23 = smov (%p1469_p1, %s31_s23), 0  ;;  %s178_s27 = sand.u32 1, %s1379_s22  }
  0x13   : > { %1861 = sst [smem:[#allocation15_spill]] %s1904_s23  ;;  %p76_p4 = por %p74_p2, %p1841_p0 }
  0x14   : > { %s64_s26 = ssub.s32 %s1371_s20, %s1904_s23  ;;  %s1846_s29 = sand.u32 1, %s1347_s14  }
  0x15   : > { %p65_p6 = scmp.eq.s32.totalorder %s64_s26, 0  ;;  %s880_s30 = sshll.u32 %s1846_s29, 8 }
  0x16   : > { %s954_s4 = sshll.u32 %s1371_s20, 7  ;;  %s1863_s1 = sld [smem:[#allocation19_spill]] }
  0x17   : > { %s1489_s28 = scalar_select %p65_p6, %s1347_s14, %s67_s25  }
  0x18   : > { %s182_s8 = scalar_lea.vmem [#allocation6], %s880_s30  ;;  %p1502_p7 = pnand %p1840_p5, %p76_p4 }
  0x19   : > { %1862 = sst [smem:[#allocation16_spill]] %s1489_s28  ;;  %s189_s9 = sshll.u32 %s182_s8, 4  ;;  %s1506_s9 = int_to_ptr.vmem [resolvable:$true] %s189_s9 }
  0x1a   : > { %s1509_s11 = scalar_lea.sflag [#allocation7], %s178_s27  ;;  %p1847_p10 = pneg %p1502_p7 }
  0x1c   : > { %s1498_s7 = scalar_lea.hbm %s1863_s1, %s954_s4  ;;  %s1168_s4 = scalar_lea.hbm %s1863_s1, 16384 }
  0x1d   : > { %s1163_s25 = scalar_lea.hbm %s1498_s7, 4096  ;;  %p1169_p13 = scmp.lt.u32.totalorder %s1498_s7, %s1863_s1 }
  0x1e   : > { %p1164_p9 = scmp.ne.s32.totalorder %s1498_s7, %s1163_s25  ;;  %p1170_p2 = scmp.lt.u32.totalorder %s1168_s4, %s1163_s25 }
  0x1f   : > { %p1172_p6 = scmp.lt.u32.totalorder %s1163_s25, %s1498_s7 }
  0x20   : > { %p1166_p11 = pnand %p1847_p10, %p1164_p9  ;;  %p1171_p4 = por %p1170_p2, %p1169_p13 }
  0x22   : > { %p1167_p12 = pneg %p1166_p11  ;;  %p1173_p5 = por %p1172_p6, %p1171_p4 }
  0x24   : > { %p1174_p3 = pnand %p1173_p5, %p1167_p12 }
  0x26   : > { %1177 = shalt.err (!%p1174_p3)
}
  0x27   : > { %s1178_s27 = scalar_lea.vmem %s1506_s9, 4096  ;;  %s1381_s8 = smov [#allocation6]  }
  0x28   : > { %p1179_p9 = scmp.ne.s32.totalorder %s1506_s9, %s1178_s27  ;;  %s1183_s26 = sshll.u32 %s1381_s8, 4  ;;  %s1184_s26 = int_to_ptr.vmem [resolvable:$false] %s1183_s26 }
  0x29   : > { %s1185_s30 = scalar_lea.vmem %s1184_s26, 8192  ;;  %p1186_p8 = scmp.lt.s32.totalorder %s1506_s9, %s1184_s26 }
  0x2a   : > { %p1181_p11 = pnand %p1179_p9, %p1847_p10  ;;  %p1187_p13 = scmp.lt.s32.totalorder %s1185_s30, %s1178_s27 }
  0x2c   : > { %p1182_p0 = pneg %p1181_p11  ;;  %p1188_p2 = por %p1187_p13, %p1186_p8 }
  0x2e   : > { %p1189_p4 = pnand %p1188_p2, %p1182_p0 }
  0x30   : > { %1192 = shalt.err (!%p1189_p4)
}
  0x31   : > { %s1382_s25 = smov 512   ;;  %s1842_s4 = smov 128  }
  0x32   : > { %s1844_s5 = smov 8   ;;  %p219_p0 = scmp.lt.s32.totalorder %s1379_s22, 13 }
  0x33   : > { %975 = dma.hbm_to_vmem [thread:$0]  (!%p1502_p7), %s1498_s7, 4096, %s1506_s9, %s1509_s11, %s1382_s25, %s1842_s4, %s1844_s5  }
  0x34   : > { %p1865_p3 = scmp.ge.s32.totalorder %s1379_s22, 1  ;;  %s1547_s27 = sadd.s32 4294967295, %s1379_s22  }
  0x35   : > { %s873_s8 = sadd.s32 4294967294, %s1379_s22   ;;  %s34_s26 = sadd.s32 1, %s1375_s21 }
  0x36   : > { %p1542_p5 = pnand %p1865_p3, %p219_p0  ;;  %s41_s30 = sadd.s32 1, %s1359_s17 }
  0x37   : > { %s1906_s26 = smov (!%p1469_p1, %s34_s26), %s1375_s21  ;;  %p48_p8 = scmp.ne.s32.totalorder %s1359_s17, %s1355_s16 }
  0x38   : > { %s1866_s6 = scalar_select %p1542_p5, 1, 0 }
  0x39   : > { %p54_p12 = scmp.ne.s32.totalorder %s1355_s16, %s1351_s15  ;;  %p36_p6 = scmp.ge.s32.totalorder %s1906_s26, 3 }
  0x3a   : > { %p55_p9 = scmp.eq.s32.totalorder %s1547_s27, 0  ;;  %p1867_p11 = scmp.eq.s32.totalorder %s1379_s22, 0 }
  0x3b   : > { %p130_p2 = scmp.eq.s32.totalorder %s1547_s27, 11  ;;  %s1908_s26 = smov (%p36_p6, %s1906_s26), 0 }
  0x3c   : > { %p1562_p13 = por %p1867_p11, %p48_p8  ;;  %1869 = sst [smem:[#allocation17_spill]] %s1908_s26 }
  0x3d   : > { %p1572_p1 = por %p55_p9, %p54_p12  ;;  %p1871_p4 = scmp.ne.s32.totalorder %s1343_s13, %s1339_s12 }
  0x3e   : > { %s38_s25 = ssub.s32 %s1375_s21, %s1908_s26  ;;  %p1585_p3 = por %p130_p2, %p48_p8 }
  0x3f   : > { %s1870_s24 = scalar_select %p1572_p1, 1, 0 }
  0x40   : > { %p1579_p0 = por %p1871_p4, %p55_p9  ;;  %p39_p11 = scmp.eq.s32.totalorder %s38_s25, 0 }
  0x41   : > { %s1873_s4 = scalar_select %p1585_p3, 1, 0 }
  0x42   : > { %s1872_s9 = scalar_select %p1579_p0, 1, 0 }
  0x43   : > { %p136_p6 = scmp.eq.s32.totalorder %s873_s8, 11  ;;  %s156_s5 = sand.u32 1, %s1359_s17  }
  0x44   : > { %s953_s29 = sshll.u32 %s1375_s21, 8  ;;  %s876_s12 = sshll.u32 %s156_s5, 4 }
  0x45   : > { %s1592_s1 = scalar_select %p39_p11, %s1359_s17, %s41_s30  }
  0x46   : > { %p1597_p10 = por %p136_p6, %p54_p12  ;;  %s1604_s26 = scalar_lea.hbm %s1836_s0, %s953_s29 }
  0x47   : > { %1874 = sst [smem:[#allocation18_spill]] %s1592_s1  ;;  %p1876_p8 = scmp.lt.s32.totalorder %s1379_s22, 12 }
  0x48   : > { %s1875_s23 = scalar_select %p1597_p10, 1, 0 }
  0x49   : > { %p1610_p9 = pnand %p1876_p8, %p1562_p13  ;;  %s160_s30 = scalar_lea.vmem [#allocation3], %s876_s12 }
  0x4a   : > { %s168_s25 = sshll.u32 %s160_s30, 4  ;;  %s1878_s21 = sand.u32 1, %s1347_s14   ;;  %s1618_s25 = int_to_ptr.vmem [resolvable:$true] %s168_s25 }
  0x4b   : > { %s1616_s1 = sshll.u32 %s1878_s21, 7  ;;  %s1620_s3 = scalar_lea.sflag [#allocation4], %s156_s5 }
  0x4c   : > { %s1193_s28 = scalar_lea.hbm %s1604_s26, 256  ;;  %p1195_p2 = pneg %p1610_p9 }
  0x4d   : > { %p1194_p12 = scmp.ne.s32.totalorder %s1604_s26, %s1193_s28  ;;  %s1198_s12 = scalar_lea.hbm %s1836_s0, 768 }
  0x4e   : > { %p1199_p11 = scmp.lt.u32.totalorder %s1604_s26, %s1836_s0  ;;  %p1200_p6 = scmp.lt.u32.totalorder %s1198_s12, %s1193_s28 }
  0x4f   : > { %p1196_p13 = pnand %p1195_p2, %p1194_p12  ;;  %p1202_p10 = scmp.lt.u32.totalorder %s1193_s28, %s1604_s26 }
  0x50   : > { %p1201_p8 = por %p1200_p6, %p1199_p11 }
  0x51   : > { %p1197_p4 = pneg %p1196_p13 }
  0x52   : > { %p1203_p3 = por %p1202_p10, %p1201_p8 }
  0x54   : > { %p1204_p0 = pnand %p1203_p3, %p1197_p4 }
  0x56   : > { %1207 = shalt.err (!%p1204_p0)
}
  0x57   : > { %s1208_s21 = scalar_lea.vmem %s1618_s25, 256  ;;  %s1385_s5 = smov [#allocation3]  }
  0x58   : > { %p1209_p12 = scmp.ne.s32.totalorder %s1618_s25, %s1208_s21  ;;  %s1213_s29 = sshll.u32 %s1385_s5, 4  ;;  %s1214_s29 = int_to_ptr.vmem [resolvable:$false] %s1213_s29 }
  0x59   : > { %s1215_s17 = scalar_lea.vmem %s1214_s29, 512  ;;  %p1216_p5 = scmp.lt.s32.totalorder %s1618_s25, %s1214_s29 }
  0x5a   : > { %p1211_p13 = pnand %p1209_p12, %p1195_p2  ;;  %p1217_p11 = scmp.lt.s32.totalorder %s1215_s17, %s1208_s21 }
  0x5c   : > { %p1212_p1 = pneg %p1211_p13  ;;  %p1218_p6 = por %p1217_p11, %p1216_p5 }
  0x5e   : > { %p1219_p10 = pnand %p1218_p6, %p1212_p1 }
  0x60   : > { %1222 = shalt.err (!%p1219_p10)
}
  0x61   : > { %s1879_s28 = smov 8   ;;  %s1880_s7 = smov 128  }
  0x62   : > { %972 = dma.hbm_to_vmem [thread:$0]  (!%p1610_p9), %s1604_s26, 256, %s1618_s25, %s1620_s3, %s1880_s7, %s1880_s7, %s1879_s28  }
  0x63   : > { %s956_s12 = sshll.u32 %s1371_s20, 11  ;;  %s203_s8 = scalar_lea.vmem [#allocation8], %s1616_s1 }
  0x64   : > { %s1655_s21 = scalar_lea.hbm %s1838_s2, %s956_s12  ;;  %s211_s29 = sshll.u32 %s203_s8, 4  ;;  %s1658_s29 = int_to_ptr.vmem [resolvable:$true] %s211_s29 }
  0x65   : > { %s1223_s17 = scalar_lea.hbm %s1655_s21, 2048  ;;  %p1881_p1 = pneg %p1502_p7 }
  0x66   : > { %p1224_p5 = scmp.ne.s32.totalorder %s1655_s21, %s1223_s17  ;;  %s1228_s3 = scalar_lea.hbm %s1838_s2, 8192 }
  0x67   : > { %p1229_p9 = scmp.lt.u32.totalorder %s1655_s21, %s1838_s2  ;;  %p1230_p2 = scmp.lt.u32.totalorder %s1228_s3, %s1223_s17 }
  0x68   : > { %p1226_p0 = pnand %p1224_p5, %p1881_p1  ;;  %p1232_p8 = scmp.lt.u32.totalorder %s1223_s17, %s1655_s21 }
  0x69   : > { %p1231_p4 = por %p1230_p2, %p1229_p9 }
  0x6a   : > { %p1227_p3 = pneg %p1226_p0 }
  0x6b   : > { %p1233_p12 = por %p1232_p8, %p1231_p4 }
  0x6d   : > { %p1234_p13 = pnand %p1233_p12, %p1227_p3 }
  0x6f   : > { %1237 = shalt.err (!%p1234_p13)
}
  0x70   : > { %s1238_s1 = scalar_lea.vmem %s1658_s29, 2048  ;;  %p1882_p6 = pmov %p1881_p1 }
  0x71   : > { %p1239_p11 = scmp.ne.s32.totalorder %s1658_s29, %s1238_s1  ;;  %s1386_s5 = smov [#allocation8]  }
  0x72   : > { %s1243_s8 = sshll.u32 %s1386_s5, 4  ;;  %s1244_s8 = int_to_ptr.vmem [resolvable:$false] %s1243_s8 }
  0x73   : > { %p1241_p10 = pnand %p1239_p11, %p1882_p6  ;;  %s1245_s26 = scalar_lea.vmem %s1244_s8, 4096 }
  0x74   : > { %p1246_p1 = scmp.lt.s32.totalorder %s1658_s29, %s1244_s8  ;;  %p1247_p0 = scmp.lt.s32.totalorder %s1245_s26, %s1238_s1 }
  0x75   : > { %p1242_p5 = pneg %p1241_p10 }
  0x76   : > { %p1248_p9 = por %p1247_p0, %p1246_p1 }
  0x78   : > { %p1249_p2 = pnand %p1248_p9, %p1242_p5 }
  0x7a   : > { %1252 = shalt.err (!%p1249_p2)
}
  0x7b   : > { %978 = dma.hbm_to_vmem [thread:$0]  (!%p1502_p7), %s1655_s21, 2048, %s1658_s29, %s1509_s11, %s1880_s7, %s1880_s7, %s1879_s28  }
  0x7c   : > { %p1883_p3 = scmp.ne.s32.totalorder %s1866_s6, 0 }
  0x7d   : > { %s1690_s17 = sand.u32 (!%p1883_p3), 1, %s1355_s16   ;;  %p1884_p4 = scmp.ne.s32.totalorder (!%p1883_p3), %s1870_s24, 0 }
  0x7e   : > { %223 = sbr.rel (%p1883_p3) target bundleno = 720 (0x2d0), region = 32  ;;  %s888_s25 = sshll.u32 (!%p1883_p3), %s1690_s17, 4 }
  0x7f   : > { %s226_s3 = scalar_lea.sflag (!%p1883_p3), [#allocation4], %s1690_s17  ;;  %s1694_s12 = scalar_lea.vmem (!%p1883_p3), [#allocation3], %s888_s25 }
  0x85   : > { %1326 = dma.done.wait (%p1884_p4), %s226_s3, 256  }
  0x86   : > { %1328 = vsyncadd (%p1884_p4), %s226_s3, 4294967040  ;;  %s234_s10 = sand.u32 1, %s1547_s27   ;;  %s236_s11 = sand.u32 1, %s1343_s13  }
  0x87   : > { %s889_s6 = sshll.u32 %s236_s11, 8  ;;  %s235_s28 = scalar_lea.sflag [#allocation7], %s234_s10 }
  0x88   : > { %s1702_s7 = scalar_lea.vmem [#allocation6], %s889_s6  ;;  %p1885_p7 = scmp.ne.s32.totalorder %s1872_s9, 0 }
  0x8a   : > { %1330 = dma.done.wait (%p1885_p7), %s235_s28, 6144  }
  0x8b   : > { %1332 = vsyncadd (%p1885_p7), %s235_s28, 4294961152  ;;  %s890_s21 = sshll.u32 %s236_s11, 7  ;;  %s1710_s30 = scalar_lea.vmem [#allocation9], %s888_s25 }
  0x8c   : > { %s1708_s29 = scalar_lea.vmem [#allocation8], %s890_s21  ;;  %p892_p8 = scmp.ne.s32.totalorder %s1363_s18, 0 }
  0x8d   : > { %v1387_v0 = vmov (!%p892_p8), 0.0  }
  0x8e   : > { %288 = sbr.rel (%p892_p8) target bundleno = 149 (0x95), region = 48  ;;  %289 = vst [vmem:[#allocation2] sm:$0xff] (!%p892_p8), %v1387_v0  ;;  %290 = vst [vmem:[#allocation2 + $0x8] sm:$0xff] (!%p892_p8), %v1387_v0 }
  0x8f   : > { %291 = vst [vmem:[#allocation2 + $0x10] sm:$0xff] (!%p892_p8), %v1387_v0  ;;  %292 = vst [vmem:[#allocation2 + $0x18] sm:$0xff] (!%p892_p8), %v1387_v0 }
  0x95 PF: > { %v1080_v1 = vld [vmem:[%s1702_s7 + $0x4] ss:$8 sps:$4 sm:$0xff]   ;;  %v1082_v2 = vld [vmem:[%s1702_s7] ss:$8 sps:$4 sm:$0xff]   ;;  %v1083_v3 = vld [vmem:[%s1702_s7 + $0x14] ss:$8 sps:$4 sm:$0xff]  }
  0x96   : > { %497 = vmatprep.subr.bf16.mxu0 %v1080_v1  ;;  %v1085_v4 = vld [vmem:[%s1702_s7 + $0x10] ss:$8 sps:$4 sm:$0xff]   ;;  %v1086_v5 = vld [vmem:[%s1702_s7 + $0x24] ss:$8 sps:$4 sm:$0xff]   ;;  %v1088_v6 = vld [vmem:[%s1702_s7 + $0x20] ss:$8 sps:$4 sm:$0xff]  }
  0x97   : > { %498 = vmatpush1.bf16.msra.mxu0 %v1082_v2  ;;  %v1089_v7 = vld [vmem:[%s1702_s7 + $0x34] ss:$8 sps:$4 sm:$0xff]   ;;  %v1091_v8 = vld [vmem:[%s1702_s7 + $0x30] ss:$8 sps:$4 sm:$0xff]   ;;  %v1092_v9 = vld [vmem:[%s1702_s7 + $0x44] ss:$8 sps:$4 sm:$0xff]  }
  0x98   : > { %499 = vmatprep.subr.bf16.mxu0 %v1083_v3  ;;  %v1094_v10 = vld [vmem:[%s1702_s7 + $0x40] ss:$8 sps:$4 sm:$0xff]   ;;  %v1095_v11 = vld [vmem:[%s1702_s7 + $0x54] ss:$8 sps:$4 sm:$0xff]   ;;  %v1097_v12 = vld [vmem:[%s1702_s7 + $0x50] ss:$8 sps:$4 sm:$0xff]  }
  0x99   : > { %v1098_v13 = vld [vmem:[%s1702_s7 + $0x64] ss:$8 sps:$4 sm:$0xff]   ;;  %v1100_v14 = vld [vmem:[%s1702_s7 + $0x60] ss:$8 sps:$4 sm:$0xff]   ;;  %v1101_v15 = vld [vmem:[%s1702_s7 + $0x74] ss:$8 sps:$4 sm:$0xff]  }
  0x9a   : > { %v1130_v16 = vld [vmem:[%s1694_s12 + $0x4] ss:$8 sps:$4 sm:$0xff]   ;;  %v1103_v17 = vld [vmem:[%s1702_s7 + $0x70] ss:$8 sps:$4 sm:$0xff]   ;;  %v1106_v19 = vld [vmem:[%s1702_s7 + $0x80] ss:$8 sps:$4 sm:$0xff]  }
  0x9b   : > { %500 = vmatpush1.bf16.msra.mxu0 %v1085_v4  ;;  %529 = vmatprep.mubr.bf16.mxu0 %v1130_v16  ;;  %v1104_v18 = vld [vmem:[%s1702_s7 + $0x84] ss:$8 sps:$4 sm:$0xff]   ;;  %v1107_v20 = vld [vmem:[%s1702_s7 + $0x94] ss:$8 sps:$4 sm:$0xff]   ;;  %v1109_v21 = vld [vmem:[%s1702_s7 + $0x90] ss:$8 sps:$4 sm:$0xff]  }
  0x9c   : > { %501 = vmatprep.subr.bf16.mxu0 %v1086_v5  ;;  %v1110_v22 = vld [vmem:[%s1702_s7 + $0xa4] ss:$8 sps:$4 sm:$0xff]   ;;  %v1112_v23 = vld [vmem:[%s1702_s7 + $0xa0] ss:$8 sps:$4 sm:$0xff]   ;;  %v1113_v24 = vld [vmem:[%s1702_s7 + $0xb4] ss:$8 sps:$4 sm:$0xff]  }
  0x9d   : > { %v1115_v25 = vld [vmem:[%s1702_s7 + $0xb0] ss:$8 sps:$4 sm:$0xff]   ;;  %v1116_v26 = vld [vmem:[%s1702_s7 + $0xc4] ss:$8 sps:$4 sm:$0xff]   ;;  %v1118_v27 = vld [vmem:[%s1702_s7 + $0xc0] ss:$8 sps:$4 sm:$0xff]  }
  0x9e   : > { %v1119_v28 = vld [vmem:[%s1702_s7 + $0xd4] ss:$8 sps:$4 sm:$0xff]   ;;  %v1121_v29 = vld [vmem:[%s1702_s7 + $0xd0] ss:$8 sps:$4 sm:$0xff]   ;;  %v1122_v30 = vld [vmem:[%s1702_s7 + $0xe4] ss:$8 sps:$4 sm:$0xff]  }
  0x9f   : > { %502 = vmatpush1.bf16.msra.mxu0 %v1088_v6  ;;  %v1124_v31 = vld [vmem:[%s1702_s7 + $0xe0] ss:$8 sps:$4 sm:$0xff]   ;;  %v1125_v32 = vld [vmem:[%s1702_s7 + $0xf4] ss:$8 sps:$4 sm:$0xff]   ;;  %v1127_v33 = vld [vmem:[%s1702_s7 + $0xf0] ss:$8 sps:$4 sm:$0xff]  }
  0xa0   : > { %503 = vmatprep.subr.bf16.mxu0 %v1089_v7  ;;  %v1128_v34 = vld [vmem:[%s1694_s12] ss:$8 sps:$4 sm:$0xff]   ;;  %v1131_v35 = vld [vmem:[%s1708_s29 + $0x4] ss:$8 sps:$4 sm:$0xff]   ;;  %v1134_v37 = vld [vmem:[%s1708_s29 + $0x14] ss:$8 sps:$4 sm:$0xff]  }
  0xa1   : > { %v1133_v36 = vld [vmem:[%s1708_s29] ss:$8 sps:$4 sm:$0xff]   ;;  %657 = vmatprep.subr.bf16.mxu1 %v1131_v35  ;;  %v1136_v38 = vld [vmem:[%s1708_s29 + $0x10] ss:$8 sps:$4 sm:$0xff]   ;;  %v1137_v39 = vld [vmem:[%s1708_s29 + $0x24] ss:$8 sps:$4 sm:$0xff]  }
  0xa2   : > { %658 = vmatpush1.bf16.msra.mxu1 %v1133_v36  ;;  %v1139_v40 = vld [vmem:[%s1708_s29 + $0x20] ss:$8 sps:$4 sm:$0xff]   ;;  %v1140_v41 = vld [vmem:[%s1708_s29 + $0x34] ss:$8 sps:$4 sm:$0xff]   ;;  %v1142_v42 = vld [vmem:[%s1708_s29 + $0x30] ss:$8 sps:$4 sm:$0xff]  }
  0xa3   : > { %504 = vmatpush1.bf16.msra.mxu0 %v1091_v8  ;;  %659 = vmatprep.subr.bf16.mxu1 %v1134_v37  ;;  %v1143_v43 = vld [vmem:[%s1708_s29 + $0x44] ss:$8 sps:$4 sm:$0xff]   ;;  %v1145_v44 = vld [vmem:[%s1708_s29 + $0x40] ss:$8 sps:$4 sm:$0xff]   ;;  %v1146_v45 = vld [vmem:[%s1708_s29 + $0x54] ss:$8 sps:$4 sm:$0xff]  }
  0xa4   : > { %505 = vmatprep.subr.bf16.mxu0 %v1092_v9  ;;  %v1148_v46 = vld [vmem:[%s1708_s29 + $0x50] ss:$8 sps:$4 sm:$0xff]   ;;  %v1149_v47 = vld [vmem:[%s1708_s29 + $0x64] ss:$8 sps:$4 sm:$0xff]   ;;  %v1151_v48 = vld [vmem:[%s1708_s29 + $0x60] ss:$8 sps:$4 sm:$0xff]  }
  0xa5   : > { %v1152_v49 = vld [vmem:[%s1708_s29 + $0x74] ss:$8 sps:$4 sm:$0xff]   ;;  %v1154_v50 = vld [vmem:[%s1708_s29 + $0x70] ss:$8 sps:$4 sm:$0xff]   ;;  %v1388_v51 = vmov 0   ;;  %v556_v9 = vld [vmem:[#allocation2] sm:$0xff] }
  0xa6   : > { %660 = vmatpush1.bf16.msra.mxu1 %v1136_v38  ;;  %689 = vmatprep.mubr.bf16.mxu1 %v1388_v51  ;;  %p943_p12 = scmp.ne.s32.totalorder %s1363_s18, 3 }
  0xa7   : > { %506 = vmatpush1.bf16.msra.mxu0 %v1094_v10  ;;  %661 = vmatprep.subr.bf16.mxu1 %v1137_v39  ;;  %v557_v10 = vld [vmem:[#allocation2 + $0x8] sm:$0xff] }
  0xa8   : > { %507 = vmatprep.subr.bf16.mxu0 %v1095_v11 }
  0xaa   : > { %662 = vmatpush1.bf16.msra.mxu1 %v1139_v40 }
  0xab   : > { %508 = vmatpush1.bf16.msra.mxu0 %v1097_v12  ;;  %663 = vmatprep.subr.bf16.mxu1 %v1140_v41  ;;  %v558_v12 = vld [vmem:[#allocation2 + $0x10] sm:$0xff] }
  0xac   : > { %509 = vmatprep.subr.bf16.mxu0 %v1098_v13 }
  0xae   : > { %664 = vmatpush1.bf16.msra.mxu1 %v1142_v42 }
  0xaf   : > { %510 = vmatpush1.bf16.msra.mxu0 %v1100_v14  ;;  %665 = vmatprep.subr.bf16.mxu1 %v1143_v43 }
  0xb0   : > { %511 = vmatprep.subr.bf16.mxu0 %v1101_v15  ;;  %v559_v15 = vld [vmem:[#allocation2 + $0x18] sm:$0xff] }
  0xb2   : > { %666 = vmatpush1.bf16.msra.mxu1 %v1145_v44 }
  0xb3   : > { %512 = vmatpush1.bf16.msra.mxu0 %v1103_v17  ;;  %667 = vmatprep.subr.bf16.mxu1 %v1146_v45 }
  0xb4   : > { %513 = vmatprep.subr.bf16.mxu0 %v1104_v18 }
  0xb6   : > { %668 = vmatpush1.bf16.msra.mxu1 %v1148_v46 }
  0xb7   : > { %514 = vmatpush1.bf16.msra.mxu0 %v1106_v19  ;;  %669 = vmatprep.subr.bf16.mxu1 %v1149_v47 }
  0xb8   : > { %515 = vmatprep.subr.bf16.mxu0 %v1107_v20 }
  0xba   : > { %670 = vmatpush1.bf16.msra.mxu1 %v1151_v48 }
  0xbb   : > { %516 = vmatpush1.bf16.msra.mxu0 %v1109_v21  ;;  %671 = vmatprep.subr.bf16.mxu1 %v1152_v49 }
  0xbc   : > { %517 = vmatprep.subr.bf16.mxu0 %v1110_v22 }
  0xbe   : > { %672 = vmatpush1.bf16.msra.mxu1 %v1154_v50 }
  0xbf   : > { %518 = vmatpush1.bf16.msra.mxu0 %v1112_v23 }
  0xc0   : > { %519 = vmatprep.subr.bf16.mxu0 %v1113_v24 }
  0xc3   : > { %520 = vmatpush1.bf16.msra.mxu0 %v1115_v25 }
  0xc4   : > { %521 = vmatprep.subr.bf16.mxu0 %v1116_v26 }
  0xc7   : > { %522 = vmatpush1.bf16.msra.mxu0 %v1118_v27 }
  0xc8   : > { %523 = vmatprep.subr.bf16.mxu0 %v1119_v28 }
  0xcb   : > { %524 = vmatpush1.bf16.msra.mxu0 %v1121_v29 }
  0xcc   : > { %525 = vmatprep.subr.bf16.mxu0 %v1122_v30 }
  0xcf   : > { %526 = vmatpush1.bf16.msra.mxu0 %v1124_v31 }
  0xd0   : > { %527 = vmatprep.subr.bf16.mxu0 %v1125_v32 }
  0xd3   : > { %528 = vmatpush1.bf16.msra.mxu0 %v1127_v33 }
  0xd6   : > { %530 = vmatmul.mubr.bf16.vlgmr.msra.gmra.mrb[0].mxu0 %v1128_v34 }
 0x1a9   : > { %v531_v52 = vpop.f32.mrb[0].mxu0 }
 0x1aa   : > { %v540_v53 = vsub.f32 0.0, %v531_v52  ;;  %v533_v54 = vpop.f32.mrb[1].mxu0 }
 0x1ab   : > { %v535_v55 = vpop.f32.mrb[2].mxu0 }
 0x1ac   : > { %v542_v56 = vmin.f32 %v540_v53, 80.0  ;;  %v541_v57 = vsub.f32 0.0, %v535_v55  ;;  %v537_v58 = vpop.f32.mrb[3].mxu0 }
 0x1ae   : > { %v544_v59 = vmul.f32 1.442695, %v542_v56  ;;  %v543_v60 = vmin.f32 %v541_v57, 80.0 }
 0x1b0   : > { %1155 = vpow2.f32 %v544_v59  ;;  %v546_v61 = vmul.f32 1.442695, %v543_v60 }
 0x1b2   : > { %1157 = vpow2.f32 %v546_v61 }
 0x1ba   : > { %v1156_v62 = vpop.eup %1155 }
 0x1bb   : > { %v548_v63 = vadd.f32 1.0, %v1156_v62 }
 0x1bc   : > { %v1158_v0 = vpop.eup %1157 }
 0x1bd   : > { %1159 = vrcp.f32 %v548_v63  ;;  %v549_v1 = vadd.f32 1.0, %v1158_v0 }
 0x1bf   : > { %1161 = vrcp.f32 %v549_v1 }
 0x1c7   : > { %v1160_v2 = vpop.eup %1159 }
 0x1c8   : > { %v552_v3 = vmul.f32 %v1160_v2, %v531_v52 }
 0x1c9   : > { %v1162_v4 = vpop.eup %1161 }
 0x1ca   : > { %v554_v5 = vmul.f32 %v552_v3, %v533_v54  ;;  %v553_v6 = vmul.f32 %v1162_v4, %v535_v55 }
 0x1cc   : > { %v555_v7 = vmul.f32 %v553_v6, %v537_v58 }
 0x1ce   : > { %v560_v8 = vpack.c.bf16 %v555_v7, %v554_v5 }
 0x1d0   : > { %690 = vmatmul.mubr.bf16.vlgmr.msra.gmra.mrb[0].mxu1 %v560_v8 }
 0x2a3   : > { %v691_v11 = vpop.f32.mrb[0].mxu1  ;;  %711 = sbr.rel (%p943_p12) target bundleno = 692 (0x2b4), region = 52 }
 0x2a4   : > { %v700_v13 = vadd.f32 %v691_v11, %v556_v9  ;;  %v693_v14 = vpop.f32.mrb[1].mxu1 }
 0x2a5   : > { %v701_v16 = vadd.f32 %v693_v14, %v557_v10  ;;  %v695_v17 = vpop.f32.mrb[2].mxu1 }
 0x2a6   : > { %704 = vst [vmem:[#allocation2] sm:$0xff] %v700_v13  ;;  %v702_v18 = vadd.f32 %v695_v17, %v558_v12  ;;  %v697_v19 = vpop.f32.mrb[3].mxu1 }
 0x2a7   : > { %705 = vst [vmem:[#allocation2 + $0x8] sm:$0xff] %v701_v16  ;;  %v703_v20 = vadd.f32 %v697_v19, %v559_v15 }
 0x2a8   : > { %706 = vst [vmem:[#allocation2 + $0x10] sm:$0xff] %v702_v18 }
 0x2a9   : > { %707 = vst [vmem:[#allocation2 + $0x18] sm:$0xff] %v703_v20 }
 0x2ad   : > { %v712_v21 = vld [vmem:[#allocation2] sm:$0xff] }
 0x2ae   : > { %v713_v22 = vld [vmem:[#allocation2 + $0x8] sm:$0xff] }
 0x2af   : > { %v714_v23 = vld [vmem:[#allocation2 + $0x10] sm:$0xff]  ;;  %v957_v24 = vpack.c.bf16 %v713_v22, %v712_v21 }
 0x2b0   : > { %v715_v25 = vld [vmem:[#allocation2 + $0x18] sm:$0xff] }
 0x2b1   : > { %v958_v26 = vpack.c.bf16 %v715_v25, %v714_v23  ;;  %728 = vst [vmem:[%s1710_s30] sm:$0xff] %v957_v24 }
 0x2b3   : > { %729 = vst [vmem:[%s1710_s30 + $0x8] sm:$0xff] %v958_v26 }
 0x2b4 PF: > { %s960_s27 = sshll.u32 %s1367_s19, 8  ;;  %s1886_s18 = sld [smem:[#allocation20_spill]] }
 0x2b5   : > { %s745_s8 = sshll.u32 %s1710_s30, 4  ;;  %s731_s26 = scalar_lea.sflag [#allocation5], %s1690_s17  ;;  %s1773_s8 = int_to_ptr.vmem [resolvable:$true] %s745_s8 }
 0x2b6   : > { %s1253_s25 = scalar_lea.vmem %s1773_s8, 256  ;;  %p1888_p11 = scmp.ne.s32.totalorder %s1873_s4, 0 }
 0x2b7   : > { %p1254_p13 = scmp.ne.s32.totalorder %s1773_s8, %s1253_s25  ;;  %s1389_s3 = smov [#allocation9]  }
 0x2b8   : > { %s1257_s12 = sshll.u32 %s1389_s3, 4  ;;  %s1258_s12 = int_to_ptr.vmem [resolvable:$false] %s1257_s12 }
 0x2b9   : > { %p1255_p6 = pnand %p1254_p13, %p1888_p11  ;;  %s1259_s19 = scalar_lea.vmem %s1258_s12, 512 }
 0x2ba   : > { %s1887_s1 = smov %s1886_s18  ;;  %s1770_s5 = scalar_lea.hbm %s1886_s18, %s960_s27 }
 0x2bb   : > { %p1256_p10 = pneg %p1255_p6  ;;  %p1260_p5 = scmp.lt.s32.totalorder %s1773_s8, %s1258_s12 }
 0x2bc   : > { %p1261_p1 = scmp.lt.s32.totalorder %s1259_s19, %s1253_s25 }
 0x2be   : > { %p1262_p0 = por %p1261_p1, %p1260_p5 }
 0x2c0   : > { %p1263_p9 = pnand %p1262_p0, %p1256_p10 }
 0x2c2   : > { %1266 = shalt.err (!%p1263_p9)
}
 0x2c3   : > { %s1267_s10 = scalar_lea.hbm %s1770_s5, 256  ;;  %s1271_s28 = scalar_lea.hbm %s1887_s1, 768 }
 0x2c4   : > { %p1268_p2 = scmp.ne.s32.totalorder %s1770_s5, %s1267_s10  ;;  %p1272_p7 = scmp.lt.u32.totalorder %s1770_s5, %s1887_s1 }
 0x2c5   : > { %p1273_p8 = scmp.lt.u32.totalorder %s1271_s28, %s1267_s10  ;;  %p1275_p13 = scmp.lt.u32.totalorder %s1267_s10, %s1770_s5 }
 0x2c6   : > { %p1269_p3 = pnand %p1268_p2, %p1888_p11 }
 0x2c7   : > { %p1274_p12 = por %p1273_p8, %p1272_p7 }
 0x2c8   : > { %p1270_p4 = pneg %p1269_p3 }
 0x2c9   : > { %p1276_p6 = por %p1275_p13, %p1274_p12 }
 0x2cb   : > { %p1277_p10 = pnand %p1276_p6, %p1270_p4 }
 0x2cd   : > { %1280 = shalt.err (!%p1277_p10)
}
 0x2ce   : > { %s1390_s29 = smov 128   ;;  %s1391_s30 = smov 8  }
 0x2cf   : > { %967 = dma.vmem_to_hbm [thread:$0]  (%p1888_p11), %s1773_s8, 256, %s1770_s5, %s731_s26, %s1390_s29, %s1390_s29, %s1391_s30  }
 0x2d0 PF: > { %p984_p5 = scmp.ge.s32.totalorder %s1379_s22, 2  ;;  %s760_s27 = sand.u32 1, %s1351_s15  }
 0x2d1   : > { %p1889_p1 = scmp.ne.s32.totalorder %s1875_s23, 0  ;;  %s761_s24 = scalar_lea.sflag [#allocation5], %s760_s27 }
 0x2d3   : > { %p980_p0 = pnand %p984_p5, %p1889_p1 }
 0x2d5   : > { %1334 = dma.done.wait (!%p980_p0), %s761_s24, 256  }
 0x2d6   : > { %1336 = vsyncadd (!%p980_p0), %s761_s24, 4294967040  ;;  %s22_s22 = sadd.s32 1, %s1379_s22   ;;  %s1890_s9 = sld [smem:[#allocation16_spill]] }
 0x2d7   : > { %p19_p9 = scmp.ge.s32.totalorder %s22_s22, 14   ;;  %s1891_s4 = sld [smem:[#allocation13_spill]] }
 0x2d8   : > { %s1892_s17 = sld [smem:[#allocation18_spill]]  ;;  %s1893_s19 = sld [smem:[#allocation14_spill]] }
 0x2d9   : > { %s1894_s5 = sld [smem:[#allocation15_spill]]  ;;  %s1895_s21 = sld [smem:[#allocation17_spill]] }
 0x2da   : > { %s1896_s12 = smov %s1343_s13  ;;  %s1897_s13 = smov %s1347_s14 }
 0x2db   : > { %s1899_s15 = smov %s1355_s16  ;;  %s1901_s18 = smov %s1371_s20 }
 0x2dc   : > { %s1898_s14 = smov %s1890_s9  ;;  %21 = sbr.rel (!%p19_p9) target bundleno = 14 (0xe), region = 109 }
 0x2dd   : > { %s1900_s16 = smov %s1891_s4 }
 0x2df   : > { %s1902_s20 = smov %s1894_s5 }
 0x2e3   :  { %766 = vsyncpa [#allocation4], 1 }
 0x2e4   :  { %768 = vsyncpa [#allocation4 + $0x1], 1 }
 0x2e5   :  { %769 = vsyncpa [#allocation7], 1 }
 0x2e6   :  { %771 = vsyncpa [#allocation7 + $0x1], 1 }
 0x2e7   :  { %772 = vsyncpa [#allocation5], 1 }
 0x2e8   :  { %774 = vsyncpa [#allocation5 + $0x1], 1 }

</bundles_post_ra>
